<compile_context>
chip_gen: v5e
topology: v5e:2x2
jax: 0.10.0
libtpu: 0.0.40
codegen_flags: <defaults>
</compile_context>

<pallas_src>
import numpy as np
import jax
import jax.numpy as jnp
from jax import lax
from jax.experimental import pallas as pl
from jax.experimental.pallas import tpu as pltpu

EPS = 1e-6


def _cdiv(a, b):
    return -(-a // b)


# -----------------------------------------------------------------------------
# Kernels
# -----------------------------------------------------------------------------
def qln_mxu_kernel(x_ref, g_ref, b_ref, gsum_ref, o_ref):
    """Group-of-4 sum of squares via a block-diagonal matmul on the idle MXU."""
    x = x_ref[...].astype(jnp.float32)            # (tile, W)
    y = x * x
    # gsum = kron(I_{W/4}, ones(4,4)); the matmul both reduces every quaternion
    # group and re-broadcasts the sum to its 4 lanes.  HIGHEST precision keeps
    # f32 accuracy (a default bf16 pass would not match torch at 1e-5).
    sumsq = jnp.dot(y, gsum_ref[...], preferred_element_type=jnp.float32,
                    precision=lax.Precision.HIGHEST)
    inv = pl.reciprocal(jnp.sqrt(sumsq + EPS) + 1e-6, approx=False)
    o_ref[...] = (g_ref[...] * (x * inv) + b_ref[...]).astype(o_ref.dtype)


def qln_butterfly_kernel(x_ref, g_ref, b_ref, o_ref):
    """Group-of-4 sum of squares via a 2-stage XOR butterfly (XLU rolls)."""
    w = x_ref.shape[-1]                           # lane width (static)
    x = x_ref[...].astype(jnp.float32)
    y = x * x

    # Per-ROW masks (period-4 lane pattern): the iota / and / cmp work is W
    # lanes, not tile*W elements, per the perf review.
    lane = lax.broadcasted_iota(jnp.int32, (1, w), 1)
    m1 = (lane & 1) == 0
    m2 = (lane & 2) == 0

    # Stage 1: add the XOR-1 lane partner -> pair sums (q0+q1 | q2+q3).
    # pltpu.roll matches jnp.roll: roll(y, s)[i] == y[(i - s) % w].
    nxt1 = pltpu.roll(y, w - 1, axis=1)           # lane i <- y[i + 1]
    prv1 = pltpu.roll(y, 1, axis=1)               # lane i <- y[i - 1]
    s1 = y + jnp.where(m1, nxt1, prv1)

    # Stage 2: add the XOR-2 partner -> full quaternion sum of squares,
    # already broadcast to every lane of its group of 4.
    nxt2 = pltpu.roll(s1, w - 2, axis=1)
    prv2 = pltpu.roll(s1, 2, axis=1)
    sumsq = s1 + jnp.where(m2, nxt2, prv2)

    inv = pl.reciprocal(jnp.sqrt(sumsq + EPS) + 1e-6, approx=False)
    o_ref[...] = (g_ref[...] * (x * inv) + b_ref[...]).astype(o_ref.dtype)


# -----------------------------------------------------------------------------
# Wrapper helpers
# -----------------------------------------------------------------------------
def _tpu_hw_info():
    """Best-effort (VMEM bytes per core, TensorCores per chip)."""
    vmem_cap = 64 * 1024 * 1024          # conservative default (v7x: 64 MiB/TC)
    cores = 1
    try:
        info = pltpu.get_tpu_info()
        v = int(getattr(info, "vmem_capacity_bytes", 0) or 0)
        if v > 0:
            vmem_cap = v                 # 128 MiB on v5e/v6e -> bigger blocks
    except Exception:
        pass
    try:
        kind = jax.devices()[0].device_kind.lower()
        if "7" in kind:                  # v7x exposes two TensorCores per chip
            cores = 2
    except Exception:
        pass
    return vmem_cap, cores


def _pick_tile(R, W, itemsize, requested, vmem_cap, cores):
    row_align = 8 if itemsize >= 4 else 16
    if requested is None:
        # VMEM bytes held live per row: double-buffered in+out blocks plus a
        # generous ~8 f32 temporaries (upcast, squares, butterfly/matmul
        # result, norm, reciprocal, scaled output).
        per_row = 4 * W * itemsize + 8 * W * 4
        budget = int(vmem_cap * 0.6)     # generation-aware (24 MiB-ish on v7x,
        requested = min(4096, max(row_align, budget // per_row))  # ~2x on v5e/v6e)
    tile = max(1, min(int(requested), R))
    if tile >= R:
        # Whole problem fits one block.  Splitting is pure serial overhead on
        # single-TensorCore chips (v5e/v6e); only split for megacore sharding.
        if cores > 1 and R >= 2 * cores * row_align and R % (cores * row_align) == 0:
            tile = R // cores
        else:
            tile = R
    else:
        tile = max(row_align, (tile // row_align) * row_align)
        if cores > 1:
            # Keep the 'parallel' grid axis balanced across TensorCores.
            steps = _cdiv(R, tile)
            if steps % cores:
                steps = _cdiv(steps, cores) * cores
                tile = max(row_align, _cdiv(_cdiv(R, steps), row_align) * row_align)
    return tile


# -----------------------------------------------------------------------------
# Public entry point
# -----------------------------------------------------------------------------
def quaternion_layer_norm(x, gamma, beta, *, tile=None, use_mxu=None):
    """x: (B, S, E, 4); gamma, beta: (E, 4).  Returns (B, S, E, 4)."""
    B, S, E, Q = x.shape
    assert Q == 4, "quaternion dim must be 4"
    T = B * S
    N = 4 * E
    itemsize = jnp.dtype(x.dtype).itemsize

    # ---- lane-dense layout (free, contiguous reshapes only) -----------------
    if N % 128 == 0:
        R, W, reps = T, N, 1
    elif (128 % N == 0) and ((T * N) % 128 == 0):
        # Small E: pack 128 // N logical rows per 128-lane row.  Quaternion
        # groups never straddle the boundary (4 | N | 128); gamma/beta repeat
        # with period N along the lanes.
        reps = 128 // N
        R, W = (T * N) // 128, 128
    else:
        # TODO(synk): awkward E (4E neither multiple nor divisor of 128) stays
        # correct but pays masked, lane-padded stores.
        R, W, reps = T, N, 1

    xk = x.reshape(R, W)
    gk = jnp.tile(gamma.reshape(1, N).astype(jnp.float32), (1, reps))
    bk = jnp.tile(beta.reshape(1, N).astype(jnp.float32), (1, reps))

    if use_mxu is None:
        # The HIGHEST-precision block-diagonal MXU reduction stays below the
        # HBM roofline on every generation (v5e..v7x) only for W == 128;
        # wider rows use the XLU butterfly instead.
        use_mxu = (W == 128)

    vmem_cap, cores = _tpu_hw_info()
    tile = _pick_tile(R, W, itemsize, tile, vmem_cap, cores)
    grid_steps = _cdiv(R, tile)

    # VMEM limit with headroom for f32 intermediates (not just the I/O blocks).
    need = 4 * tile * W * itemsize + 8 * tile * W * 4
    if use_mxu:
        need += 2 * W * W * 4
    vmem_limit = int(min(int(vmem_cap * 0.75),
                         max(32 * 1024 * 1024, need + (4 << 20))))

    in_specs = [
        pl.BlockSpec((tile, W), lambda i: (i, 0)),
        pl.BlockSpec((1, W), lambda i: (0, 0)),
        pl.BlockSpec((1, W), lambda i: (0, 0)),
    ]
    args = [xk, gk, bk]
    if use_mxu:
        gsum = jnp.asarray(np.kron(np.eye(W // 4, dtype=np.float32),
                                   np.ones((4, 4), dtype=np.float32)))
        in_specs.append(pl.BlockSpec((W, W), lambda i: (0, 0)))
        args.append(gsum)
        flops = 2 * R * W * W + 10 * R * W
        bytes_acc = 2 * R * W * itemsize + 2 * W * 4 + W * W * 4
    else:
        flops = 14 * R * W
        bytes_acc = 2 * R * W * itemsize + 2 * W * 4

    kernel = qln_mxu_kernel if use_mxu else qln_butterfly_kernel

    out = pl.pallas_call(
        kernel,
        out_shape=jax.ShapeDtypeStruct((R, W), x.dtype),
        grid_spec=pl.GridSpec(
            grid=(grid_steps,),
            in_specs=in_specs,
            out_specs=pl.BlockSpec((tile, W), lambda i: (i, 0)),
        ),
        compiler_params=pltpu.CompilerParams(
            dimension_semantics=("parallel",),
            vmem_limit_bytes=vmem_limit,
        ),
        cost_estimate=pl.CostEstimate(
            flops=flops,
            transcendentals=2 * R * W,     # sqrt + reciprocal on the full (R, W)
            bytes_accessed=bytes_acc,
        ),
    )(*args)

    return out.reshape(B, S, E, 4)


def quaternion_layer_norm_ref(x, gamma, beta):
    norm = jnp.sqrt(jnp.sum(x * x, axis=-1, keepdims=True) + EPS)
    x_norm = x / (norm + 1e-6)
    return gamma[None, None] * x_norm + beta[None, None]


if __name__ == "__main__":
    key = jax.random.PRNGKey(0)
    kx, kg, kb = jax.random.split(key, 3)

    # Primary shape: (B, S, E, 4) with E a multiple of 32 -> lane-dense 4E = 128.
    B, S, E = 2, 8, 32
    x = jax.random.normal(kx, (B, S, E, 4), dtype=jnp.float32)
    # Module init is gamma=ones, beta=zeros; perturb deterministically so the
    # parameter layout handling is actually exercised.
    gamma = jnp.ones((E, 4), jnp.float32) + 0.1 * jax.random.normal(kg, (E, 4), jnp.float32)
    beta = 0.1 * jax.random.normal(kb, (E, 4), jnp.float32)

    ref = quaternion_layer_norm_ref(x, gamma, beta)

    # Default path (MXU block-diagonal reduction for W == 128).
    out = jax.block_until_ready(quaternion_layer_norm(x, gamma, beta))
    assert out.shape == x.shape
    assert jnp.allclose(out, ref, atol=1e-5, rtol=1e-5), "MXU path mismatch vs reference"

    # XLU butterfly path (used for wide rows) -- forced here for coverage.
    out_b = jax.block_until_ready(quaternion_layer_norm(x, gamma, beta, use_mxu=False))
    assert jnp.allclose(out_b, ref, atol=1e-5, rtol=1e-5), "butterfly path mismatch vs reference"

    # Small-E path: rows flattened into lane-dense 128-wide rows, gamma tiled.
    E2 = 8
    x2 = jax.random.normal(kx, (B, S, E2, 4), dtype=jnp.float32)
    g2 = jnp.ones((E2, 4), jnp.float32) + 0.1 * jax.random.normal(kg, (E2, 4), jnp.float32)
    b2 = 0.1 * jax.random.normal(kb, (E2, 4), jnp.float32)
    out2 = jax.block_until_ready(quaternion_layer_norm(x2, g2, b2))
    assert jnp.allclose(out2, quaternion_layer_norm_ref(x2, g2, b2),
                        atol=1e-5, rtol=1e-5), "packed small-E path mismatch vs reference"

    print("KERNEL_OK")
</pallas_src>

<mosaic_0001>
module attributes {stable_mosaic.version = 11 : i64} {
  func.func @qln_mxu_kernel(%arg0: i32, %arg1: memref<16x128xf32, #tpu.memory_space<vmem>>, %arg2: memref<1x128xf32, #tpu.memory_space<vmem>>, %arg3: memref<1x128xf32, #tpu.memory_space<vmem>>, %arg4: memref<128x128xf32, #tpu.memory_space<vmem>>, %arg5: memref<16x128xf32, #tpu.memory_space<vmem>>) attributes {dimension_semantics = [#tpu.dimension_semantics<parallel>], iteration_bounds = array<i64: 1>, scalar_prefetch = 0 : i64, scratch_operands = 0 : i64, tpu.core_type = #tpu.core_type<tc>, window_params = [{transform_indices = @transform_0, window_bounds = array<i64: 16, 128>}, {pipeline_mode = #tpu.pipeline_mode<synchronous>, transform_indices = @transform_1, window_bounds = array<i64: 1, 128>}, {pipeline_mode = #tpu.pipeline_mode<synchronous>, transform_indices = @transform_2, window_bounds = array<i64: 1, 128>}, {pipeline_mode = #tpu.pipeline_mode<synchronous>, transform_indices = @transform_3, window_bounds = array<i64: 128, 128>}, {transform_indices = @transform_4, window_bounds = array<i64: 16, 128>}]} {
    %c0 = arith.constant 0 : index
    %c0_0 = arith.constant 0 : index
    %0 = vector.load %arg1[%c0, %c0_0] : memref<16x128xf32, #tpu.memory_space<vmem>>, vector<16x128xf32>
    %1 = arith.mulf %0, %0 : vector<16x128xf32>
    %c0_1 = arith.constant 0 : index
    %c0_2 = arith.constant 0 : index
    %2 = vector.load %arg4[%c0_1, %c0_2] : memref<128x128xf32, #tpu.memory_space<vmem>>, vector<128x128xf32>
    %cst = arith.constant dense<0.000000e+00> : vector<16x128xf32>
    %3 = tpu.matmul %1, %2, %cst {dimension_numbers = #tpu.dot_dimension_numbers<[1], [0], [0], [1], [0, 0, 1, 1], [], []>, precision = #tpu.contract_precision<fp32>} : vector<16x128xf32>, vector<128x128xf32>, vector<16x128xf32> -> vector<16x128xf32>
    %cst_3 = arith.constant 9.99999997E-7 : f32
    %4 = vector.broadcast %cst_3 : f32 to vector<16x128xf32>
    %5 = arith.addf %3, %4 : vector<16x128xf32>
    %6 = math.sqrt %5 : vector<16x128xf32>
    %cst_4 = arith.constant 9.99999997E-7 : f32
    %7 = vector.broadcast %cst_4 : f32 to vector<16x128xf32>
    %8 = arith.addf %6, %7 : vector<16x128xf32>
    %9 = tpu.reciprocal %8 : vector<16x128xf32> -> vector<16x128xf32>
    %c0_5 = arith.constant 0 : index
    %c0_6 = arith.constant 0 : index
    %10 = vector.load %arg2[%c0_5, %c0_6] : memref<1x128xf32, #tpu.memory_space<vmem>>, vector<1x128xf32>
    %11 = arith.mulf %0, %9 : vector<16x128xf32>
    %12 = vector.broadcast %10 : vector<1x128xf32> to vector<16x128xf32>
    %13 = arith.mulf %12, %11 : vector<16x128xf32>
    %c0_7 = arith.constant 0 : index
    %c0_8 = arith.constant 0 : index
    %14 = vector.load %arg3[%c0_7, %c0_8] : memref<1x128xf32, #tpu.memory_space<vmem>>, vector<1x128xf32>
    %15 = vector.broadcast %14 : vector<1x128xf32> to vector<16x128xf32>
    %16 = arith.addf %13, %15 : vector<16x128xf32>
    %c0_9 = arith.constant 0 : index
    %c0_10 = arith.constant 0 : index
    %17 = vector.load %arg5[%c0_9, %c0_10] : memref<16x128xf32, #tpu.memory_space<vmem>>, vector<16x128xf32>
    tpu.vector_store %arg5[%c0_9, %c0_10], %16 {strides = array<i32>} : memref<16x128xf32, #tpu.memory_space<vmem>>, vector<16x128xf32>,
    return
  }
  func.func @transform_0(%arg0: i32) -> (i32, i32) {
    %c0_i32 = arith.constant 0 : i32
    %c0_i32_0 = arith.constant 0 : i32
    return %arg0, %c0_i32 : i32, i32
  }
  func.func @transform_1(%arg0: i32) -> (i32, i32) {
    %c0_i32 = arith.constant 0 : i32
    %c0_i32_0 = arith.constant 0 : i32
    %c0_i32_1 = arith.constant 0 : i32
    return %c0_i32, %c0_i32_0 : i32, i32
  }
  func.func @transform_2(%arg0: i32) -> (i32, i32) {
    %c0_i32 = arith.constant 0 : i32
    %c0_i32_0 = arith.constant 0 : i32
    %c0_i32_1 = arith.constant 0 : i32
    return %c0_i32, %c0_i32_0 : i32, i32
  }
  func.func @transform_3(%arg0: i32) -> (i32, i32) {
    %c0_i32 = arith.constant 0 : i32
    %c0_i32_0 = arith.constant 0 : i32
    %c0_i32_1 = arith.constant 0 : i32
    return %c0_i32, %c0_i32_0 : i32, i32
  }
  func.func @transform_4(%arg0: i32) -> (i32, i32) {
    %c0_i32 = arith.constant 0 : i32
    %c0_i32_0 = arith.constant 0 : i32
    return %arg0, %c0_i32 : i32, i32
  }
}

</mosaic_0001>

<bundles_post_ra>
// kernel: tpu_custom_call.1
= control target key start
LH: loop header
LB: loop body
LE: loop exit
PB: predicated region body
PF: predicated region fallthrough
CT: control target
= control target key end

     0   :  { %9 = vsyncpa [#allocation3], 0  ;;  %s964_s0 = inlined_call_operand.hbm [shape: f32[16,128], index: 0, kind: input, shape index: {}]   ;;  %s965_s1 = inlined_call_operand.hbm [shape: f32[1,128], index: 1, kind: input, shape index: {}]   ;;  %s966_s2 = inlined_call_operand.vmem [shape: f32[1,128], index: 2, kind: input, shape index: {}]   ;;  %s967_s3 = inlined_call_operand.hbm [shape: f32[128,128], index: 3, kind: input, shape index: {}]   ;;  %s968_s4 = inlined_call_operand.hbm [shape: f32[16,128], index: 4, kind: output, shape index: {}]  }
   0x1   :  { %10 = vsyncpa [#allocation6], 0  ;;  %s30_s17 = sshll.u32 %s965_s1, 4  ;;  %s31_s17 = int_to_ptr.hbm [resolvable:$true] %s30_s17 }
   0x2   :  { %11 = vsyncpa [#allocation4], 0  ;;  %s695_s18 = smov [#allocation5]   ;;  %s16_s22 = sshll.u32 %s964_s0, 4  ;;  %s17_s22 = int_to_ptr.hbm [resolvable:$true] %s16_s22 }
   0x3   :  { %s32_s19 = sshll.u32 %s695_s18, 4  ;;  %s696_s23 = smov [#allocation2]   ;;  %s33_s19 = int_to_ptr.vmem [resolvable:$true] %s32_s19 }
   0x4   :  { %35 = dma.hbm_to_vmem [thread:$0]  %s31_s17, 16, %s33_s19, [#allocation6]  }
   0x5   :  { %s18_s24 = sshll.u32 %s696_s23, 4  ;;  %s697_s25 = smov 128   ;;  %s19_s24 = int_to_ptr.vmem [resolvable:$true] %s18_s24 }
   0x6   :  { %s698_s26 = smov 8   ;;  %s42_s28 = sshll.u32 %s967_s3, 4  ;;  %s43_s28 = int_to_ptr.hbm [resolvable:$true] %s42_s28 }
   0x7   :  { %24 = dma.hbm_to_vmem [thread:$0]  %s17_s22, 256, %s19_s24, [#allocation3], %s697_s25, %s697_s25, %s698_s26  }
   0x8   :  { %s699_s29 = smov [#allocation7]  }
   0x9   :  { %s44_s30 = sshll.u32 %s699_s29, 4  ;;  %s45_s30 = int_to_ptr.vmem [resolvable:$true] %s44_s30 }
   0xa   :  { %50 = dma.hbm_to_vmem [thread:$0]  %s43_s28, 2048, %s45_s30, [#allocation6], %s697_s25, %s697_s25, %s698_s26  }
   0xb   :  { %689 = dma.done.wait [#allocation3], 256  }
   0xc   :  { %690 = vsyncadd [#allocation3], 4294967040 }
   0xd   :  { %691 = dma.done.wait [#allocation6], 2064  }
   0xe   :  { %692 = vsyncadd [#allocation6], 4294965232  ;;  %v82_v0 = vld [vmem:[#allocation7 + $0x78] sm:$0xff]  ;;  %v81_v1 = vld [vmem:[#allocation7 + $0x70] sm:$0xff]  ;;  %s700_s5 = smov [#allocation8]   ;;  %s531_s9 = sshll.u32 %s968_s4, 4  ;;  %s532_s9 = int_to_ptr.hbm [resolvable:$true] %s531_s9 }
   0xf   :  { %v80_v2 = vld [vmem:[#allocation7 + $0x68] sm:$0xff]  ;;  %v741_v3 = vand.u32 4294901760, %v82_v0  ;;  %v743_v4 = vand.u32 4294901760, %v81_v1  ;;  %v79_v6 = vld [vmem:[#allocation7 + $0x60] sm:$0xff]  ;;  %v78_v7 = vld [vmem:[#allocation7 + $0x58] sm:$0xff]  ;;  %s529_s6 = sshll.u32 %s700_s5, 4  ;;  %s530_s6 = int_to_ptr.vmem [resolvable:$true] %s529_s6 }
  0x10   :  { %v745_v5 = vand.u32 4294901760, %v80_v2  ;;  %v77_v8 = vld [vmem:[#allocation7 + $0x50] sm:$0xff]  ;;  %v747_v9 = vand.u32 4294901760, %v79_v6  ;;  %v749_v10 = vand.u32 4294901760, %v78_v7  ;;  %v76_v12 = vld [vmem:[#allocation7 + $0x48] sm:$0xff]  ;;  %v75_v13 = vld [vmem:[#allocation7 + $0x40] sm:$0xff] }
  0x11   :  { %v751_v11 = vand.u32 4294901760, %v77_v8  ;;  %84 = vmatpush.msra.mxu0 %v741_v3  ;;  %v133_v14 = vsub.f32 %v82_v0, %v741_v3  ;;  %v139_v15 = vsub.f32 %v81_v1, %v743_v4  ;;  %297 = vmatpush.msra.mxu3 %v741_v3  ;;  %v758_v17 = vand.u32 4294901760, %v76_v12  ;;  %v74_v18 = vld [vmem:[#allocation7 + $0x38] sm:$0xff]  ;;  %v73_v26 = vld [vmem:[#allocation7 + $0x30] sm:$0xff]  ;;  %v72_v36 = vld [vmem:[#allocation7 + $0x28] sm:$0xff] }
  0x12   :  { %v145_v16 = vsub.f32 %v80_v2, %v745_v5  ;;  %v151_v19 = vsub.f32 %v79_v6, %v747_v9  ;;  %v157_v20 = vsub.f32 %v78_v7, %v749_v10  ;;  %v762_v21 = vand.u32 4294901760, %v75_v13  ;;  %v71_v42 = vld [vmem:[#allocation7 + $0x20] sm:$0xff]  ;;  %v70_v48 = vld [vmem:[#allocation7 + $0x18] sm:$0xff]  ;;  %v69_v54 = vld [vmem:[#allocation7 + $0x10] sm:$0xff] }
  0x13   :  { %86 = vmatpush.msra.mxu0 %v743_v4  ;;  %239 = vmatpush.msra.mxu2 %v133_v14  ;;  %v765_v22 = vand.u32 4294901760, %v133_v14  ;;  %v767_v23 = vand.u32 4294901760, %v139_v15  ;;  %v163_v25 = vsub.f32 %v77_v8, %v751_v11  ;;  %v169_v28 = vsub.f32 %v76_v12, %v758_v17  ;;  %v68_v60 = vld [vmem:[#allocation7 + $0x8] sm:$0xff]  ;;  %v67_v2 = vld [vmem:[#allocation7] sm:$0xff] }
  0x14   :  { %v769_v24 = vand.u32 4294901760, %v145_v16  ;;  %299 = vmatpush.msra.mxu3 %v743_v4  ;;  %v773_v27 = vand.u32 4294901760, %v151_v19  ;;  %v776_v29 = vand.u32 4294901760, %v74_v18  ;;  %v782_v33 = vand.u32 4294901760, %v157_v20 }
  0x15   :  { %88 = vmatpush.msra.mxu0 %v745_v5  ;;  %242 = vmatpush.msra.mxu2 %v139_v15  ;;  %v135_v30 = vsub.f32 %v133_v14, %v765_v22  ;;  %v141_v31 = vsub.f32 %v139_v15, %v767_v23  ;;  %v175_v34 = vsub.f32 %v75_v13, %v762_v21  ;;  %v786_v35 = vand.u32 4294901760, %v73_v26 }
  0x16   :  { %v147_v32 = vsub.f32 %v145_v16, %v769_v24  ;;  %301 = vmatpush.msra.mxu3 %v745_v5  ;;  %v153_v39 = vsub.f32 %v151_v19, %v773_v27  ;;  %v790_v40 = vand.u32 4294901760, %v163_v25  ;;  %v793_v41 = vand.u32 4294901760, %v169_v28 }
  0x17   :  { %90 = vmatpush.msra.mxu0 %v747_v9  ;;  %245 = vmatpush.msra.mxu2 %v145_v16  ;;  %v136_v37 = vand.u32 4294901760, %v135_v30  ;;  %v142_v38 = vand.u32 4294901760, %v141_v31  ;;  %v159_v44 = vsub.f32 %v157_v20, %v782_v33  ;;  %v181_v45 = vsub.f32 %v74_v18, %v776_v29 }
  0x18   :  { %303 = vmatpush.msra.mxu3 %v747_v9  ;;  %v148_v43 = vand.u32 4294901760, %v147_v32  ;;  %v798_v46 = vand.u32 4294901760, %v72_v36  ;;  %v801_v47 = vand.u32 4294901760, %v175_v34  ;;  %v154_v49 = vand.u32 4294901760, %v153_v39 }
  0x19   :  { %92 = vmatpush.msra.mxu0 %v749_v10  ;;  %137 = vmatpush.msra.mxu1 %v136_v37  ;;  %v165_v50 = vsub.f32 %v163_v25, %v790_v40  ;;  %v187_v51 = vsub.f32 %v73_v26, %v786_v35  ;;  %v806_v52 = vand.u32 4294901760, %v71_v42  ;;  %v171_v53 = vsub.f32 %v169_v28, %v793_v41 }
  0x1a   :  { %248 = vmatpush.msra.mxu2 %v151_v19  ;;  %305 = vmatpush.msra.mxu3 %v749_v10  ;;  %v160_v55 = vand.u32 4294901760, %v159_v44  ;;  %v193_v56 = vsub.f32 %v72_v36, %v798_v46  ;;  %v812_v57 = vand.u32 4294901760, %v70_v48  ;;  %v814_v58 = vand.u32 4294901760, %v181_v45 }
  0x1b   :  { %94 = vmatpush.msra.mxu0 %v751_v11  ;;  %143 = vmatpush.msra.mxu1 %v142_v38  ;;  %v177_v59 = vsub.f32 %v175_v34, %v801_v47  ;;  %v166_v61 = vand.u32 4294901760, %v165_v50  ;;  %v199_v62 = vsub.f32 %v71_v42, %v806_v52  ;;  %v820_v63 = vand.u32 4294901760, %v69_v54 }
  0x1c   :  { %251 = vmatpush.msra.mxu2 %v157_v20  ;;  %307 = vmatpush.msra.mxu3 %v751_v11  ;;  %v822_v0 = vand.u32 4294901760, %v187_v51  ;;  %v172_v1 = vand.u32 4294901760, %v171_v53  ;;  %v183_v6 = vsub.f32 %v181_v45, %v814_v58  ;;  %v205_v7 = vsub.f32 %v70_v48, %v812_v57  ;;  %v874_v53 = vld [vmem:[#allocation2 + $0x8] sm:$0xff] }
  0x1d   :  { %96 = vmatpush.msra.mxu0 %v758_v17  ;;  %149 = vmatpush.msra.mxu1 %v148_v43  ;;  %v828_v8 = vand.u32 4294901760, %v68_v60  ;;  %v830_v12 = vand.u32 4294901760, %v193_v56  ;;  %v178_v13 = vand.u32 4294901760, %v177_v59  ;;  %v211_v15 = vsub.f32 %v69_v54, %v820_v63 }
  0x1e   :  { %254 = vmatpush.msra.mxu2 %v163_v25  ;;  %309 = vmatpush.msra.mxu3 %v758_v17  ;;  %v189_v14 = vsub.f32 %v187_v51, %v822_v0  ;;  %v836_v16 = vand.u32 4294901760, %v67_v2  ;;  %v838_v18 = vand.u32 4294901760, %v199_v62  ;;  %v184_v19 = vand.u32 4294901760, %v183_v6 }
  0x1f   :  { %98 = vmatpush.msra.mxu0 %v762_v21  ;;  %155 = vmatpush.msra.mxu1 %v154_v49  ;;  %v195_v20 = vsub.f32 %v193_v56, %v830_v12  ;;  %v217_v25 = vsub.f32 %v68_v60, %v828_v8  ;;  %v844_v26 = vand.u32 4294901760, %v205_v7 }
  0x20   :  { %257 = vmatpush.msra.mxu2 %v169_v28  ;;  %311 = vmatpush.msra.mxu3 %v762_v21  ;;  %v846_v28 = vld [vmem:[#allocation2] sm:$0xff]  ;;  %v190_v30 = vand.u32 4294901760, %v189_v14  ;;  %v201_v31 = vsub.f32 %v199_v62, %v838_v18  ;;  %v223_v32 = vsub.f32 %v67_v2, %v836_v16 }
  0x21   :  { %100 = vmatpush.msra.mxu0 %v776_v29  ;;  %161 = vmatpush.msra.mxu1 %v160_v55  ;;  %v65_v36 = vmul.f32 %v846_v28, %v846_v28  ;;  %v196_v37 = vand.u32 4294901760, %v195_v20  ;;  %v207_v38 = vsub.f32 %v205_v7, %v844_v26  ;;  %v859_v39 = vand.u32 4294901760, %v217_v25 }
  0x22   :  { %260 = vmatpush.msra.mxu2 %v175_v34  ;;  %313 = vmatpush.msra.mxu3 %v776_v29  ;;  %v852_v34 = vand.u32 4294901760, %v211_v15  ;;  %v202_v42 = vand.u32 4294901760, %v201_v31  ;;  %v864_v44 = vand.u32 4294901760, %v223_v32 }
  0x23   :  { %102 = vmatpush.msra.mxu0 %v786_v35  ;;  %167 = vmatpush.msra.mxu1 %v166_v61  ;;  %v208_v48 = vand.u32 4294901760, %v207_v38  ;;  %v219_v49 = vsub.f32 %v217_v25, %v859_v39 }
  0x24   :  { %263 = vmatpush.msra.mxu2 %v181_v45  ;;  %315 = vmatpush.msra.mxu3 %v786_v35  ;;  %v213_v43 = vsub.f32 %v211_v15, %v852_v34  ;;  %v867_v45 = vand.u32 4294901760, %v65_v36 }
  0x25   :  { %104 = vmatpush.msra.mxu0 %v798_v46  ;;  %173 = vmatpush.msra.mxu1 %v172_v1  ;;  %v220_v55 = vand.u32 4294901760, %v219_v49 }
  0x26   :  { %266 = vmatpush.msra.mxu2 %v187_v51  ;;  %317 = vmatpush.msra.mxu3 %v798_v46  ;;  %v214_v50 = vand.u32 4294901760, %v213_v43  ;;  %v225_v51 = vsub.f32 %v223_v32, %v864_v44  ;;  %v116_v54 = vsub.f32 %v65_v36, %v867_v45 }
  0x27   :  { %106 = vmatpush.msra.mxu0 %v806_v52  ;;  %179 = vmatpush.msra.mxu1 %v178_v13 }
  0x28   :  { %269 = vmatpush.msra.mxu2 %v193_v56  ;;  %319 = vmatpush.msra.mxu3 %v806_v52  ;;  %v66_v56 = vmul.f32 %v874_v53, %v874_v53  ;;  %v226_v59 = vand.u32 4294901760, %v225_v51  ;;  %v117_v60 = vand.u32 4294901760, %v116_v54 }
  0x29   :  { %108 = vmatpush.msra.mxu0 %v812_v57  ;;  %185 = vmatpush.msra.mxu1 %v184_v19 }
  0x2a   :  { %272 = vmatpush.msra.mxu2 %v199_v62  ;;  %321 = vmatpush.msra.mxu3 %v812_v57  ;;  %v888_v61 = vand.u32 4294901760, %v66_v56 }
  0x2b   :  { %110 = vmatpush.msra.mxu0 %v820_v63  ;;  %191 = vmatpush.msra.mxu1 %v190_v30 }
  0x2c   :  { %275 = vmatpush.msra.mxu2 %v205_v7  ;;  %323 = vmatpush.msra.mxu3 %v820_v63 }
  0x2d   :  { %112 = vmatpush.msra.mxu0 %v828_v8  ;;  %197 = vmatpush.msra.mxu1 %v196_v37 }
  0x2e   :  { %278 = vmatpush.msra.mxu2 %v211_v15  ;;  %325 = vmatpush.msra.mxu3 %v828_v8 }
  0x2f   :  { %114 = vmatpush.msra.mxu0 %v836_v16  ;;  %203 = vmatpush.msra.mxu1 %v202_v42 }
  0x30   :  { %281 = vmatpush.msra.mxu2 %v217_v25  ;;  %327 = vmatpush.msra.mxu3 %v836_v16 }
  0x31   :  { %344 = vmatpush.msrb.mxu0 %v765_v22  ;;  %209 = vmatpush.msra.mxu1 %v208_v48 }
  0x32   :  { %284 = vmatpush.msra.mxu2 %v223_v32  ;;  %561 = vmatpush.msrb.mxu3 %v741_v3 }
  0x33   :  { %348 = vmatpush.msrb.mxu0 %v767_v23  ;;  %215 = vmatpush.msra.mxu1 %v214_v50 }
  0x34   :  { %545 = vmatpush.msrb.mxu2 %v765_v22  ;;  %562 = vmatpush.msrb.mxu3 %v743_v4  ;;  %v118_v22 = vsub.f32 %v116_v54, %v117_v60 }
  0x35   :  { %352 = vmatpush.msrb.mxu0 %v769_v24  ;;  %221 = vmatpush.msra.mxu1 %v220_v55 }
  0x36   :  { %546 = vmatpush.msrb.mxu2 %v767_v23  ;;  %563 = vmatpush.msrb.mxu3 %v745_v5  ;;  %v124_v23 = vsub.f32 %v66_v56, %v888_v61 }
  0x37   :  { %356 = vmatpush.msrb.mxu0 %v773_v27  ;;  %227 = vmatpush.msra.mxu1 %v226_v59 }
  0x38   :  { %547 = vmatpush.msrb.mxu2 %v769_v24  ;;  %564 = vmatpush.msrb.mxu3 %v747_v9 }
  0x39   :  { %360 = vmatpush.msrb.mxu0 %v782_v33  ;;  %415 = vmatpush.msrb.mxu1 %v741_v3  ;;  %v119_v3 = vand.u32 4294901760, %v118_v22 }
  0x3a   :  { %548 = vmatpush.msrb.mxu2 %v773_v27  ;;  %565 = vmatpush.msrb.mxu3 %v749_v10 }
  0x3b   :  { %364 = vmatpush.msrb.mxu0 %v790_v40  ;;  %417 = vmatpush.msrb.mxu1 %v743_v4  ;;  %v125_v4 = vand.u32 4294901760, %v124_v23 }
  0x3c   :  { %549 = vmatpush.msrb.mxu2 %v782_v33  ;;  %566 = vmatpush.msrb.mxu3 %v751_v11 }
  0x3d   :  { %368 = vmatpush.msrb.mxu0 %v793_v41  ;;  %419 = vmatpush.msrb.mxu1 %v745_v5  ;;  %v126_v5 = vsub.f32 %v124_v23, %v125_v4 }
  0x3e   :  { %550 = vmatpush.msrb.mxu2 %v790_v40  ;;  %120 = vmatmul.f32.vlgmr.msra.gmra.mxu0 %v119_v3 }
  0x3f   :  { %372 = vmatpush.msrb.mxu0 %v801_v47  ;;  %421 = vmatpush.msrb.mxu1 %v747_v9  ;;  %v127_v9 = vand.u32 4294901760, %v126_v5 }
  0x40   :  { %551 = vmatpush.msrb.mxu2 %v793_v41  ;;  %567 = vmatpush.msrb.mxu3 %v758_v17 }
  0x41   :  { %423 = vmatpush.msrb.mxu1 %v749_v10  ;;  %376 = vmatpush.msrb.mxu0 %v814_v58 }
  0x42   :  { %552 = vmatpush.msrb.mxu2 %v801_v47  ;;  %568 = vmatpush.msrb.mxu3 %v762_v21 }
  0x43   :  { %287 = vmatmul.f32.vlgmr.msra.gmra.mxu2 %v116_v54  ;;  %380 = vmatpush.msrb.mxu0 %v822_v0 }
  0x44   :  { %553 = vmatpush.msrb.mxu2 %v814_v58  ;;  %425 = vmatpush.msrb.mxu1 %v751_v11 }
  0x45   :  { %331 = vmatmul.f32.vlgmr.msra.gmra.mxu3 %v117_v60  ;;  %384 = vmatpush.msrb.mxu0 %v830_v12 }
  0x46   :  { %554 = vmatpush.msrb.mxu2 %v822_v0  ;;  %427 = vmatpush.msrb.mxu1 %v758_v17 }
  0x47   :  { %569 = vmatpush.msrb.mxu3 %v776_v29  ;;  %229 = vmatmul.f32.vlgmr.msra.gmra.mxu1 %v867_v45 }
  0x48   :  { %555 = vmatpush.msrb.mxu2 %v830_v12  ;;  %388 = vmatpush.msrb.mxu0 %v838_v18 }
  0x49   :  { %429 = vmatpush.msrb.mxu1 %v762_v21  ;;  %570 = vmatpush.msrb.mxu3 %v786_v35 }
  0x4a   :  { %128 = vmatmul.f32.gmra.mxu0 %v127_v9  ;;  %556 = vmatpush.msrb.mxu2 %v838_v18  ;;  %v583_v9 = vld [vmem:[#allocation5] ss:$0 sm:$0xff] }
  0x4b   :  { %392 = vmatpush.msrb.mxu0 %v844_v26  ;;  %431 = vmatpush.msrb.mxu1 %v776_v29 }
  0x4c   :  { %571 = vmatpush.msrb.mxu3 %v798_v46  ;;  %292 = vmatmul.f32.gmra.mxu2 %v124_v23 }
  0x4d   :  { %557 = vmatpush.msrb.mxu2 %v844_v26  ;;  %396 = vmatpush.msrb.mxu0 %v852_v34 }
  0x4e   :  { %433 = vmatpush.msrb.mxu1 %v786_v35  ;;  %572 = vmatpush.msrb.mxu3 %v806_v52 }
  0x4f   :  { %337 = vmatmul.f32.gmra.mxu3 %v125_v4  ;;  %558 = vmatpush.msrb.mxu2 %v852_v34 }
  0x50   :  { %400 = vmatpush.msrb.mxu0 %v859_v39  ;;  %435 = vmatpush.msrb.mxu1 %v798_v46 }
  0x51   :  { %573 = vmatpush.msrb.mxu3 %v812_v57  ;;  %233 = vmatmul.f32.gmra.mxu1 %v888_v61 }
  0x52   :  { %559 = vmatpush.msrb.mxu2 %v859_v39  ;;  %404 = vmatpush.msrb.mxu0 %v864_v44 }
  0x53   :  { %437 = vmatpush.msrb.mxu1 %v806_v52  ;;  %574 = vmatpush.msrb.mxu3 %v820_v63 }
  0x54   :  { %406 = vmatmul.f32.vlgmr.msrb.gmra.mxu0 %v867_v45  ;;  %560 = vmatpush.msrb.mxu2 %v864_v44 }
  0x55   :  { %439 = vmatpush.msrb.mxu1 %v812_v57  ;;  %575 = vmatpush.msrb.mxu3 %v828_v8 }
  0x56   :  { %410 = vmatmul.f32.vlgmr.msrb.gmra.mxu2 %v888_v61 }
  0x57   :  { %441 = vmatpush.msrb.mxu1 %v820_v63  ;;  %576 = vmatpush.msrb.mxu3 %v836_v16 }
  0x58   :  { %451 = vmatmul.f32.vlgmr.msrb.gmra.mxu3 %v888_v61 }
  0x59   :  { %443 = vmatpush.msrb.mxu1 %v828_v8 }
  0x5b   :  { %445 = vmatpush.msrb.mxu1 %v836_v16 }
  0x5c   :  { %447 = vmatmul.f32.vlgmr.msrb.gmra.mxu1 %v867_v45 }
  0xbb   :  { %v121_v10 = vpop.f32.mrf.mxu0 }
  0xbc   :  { %v122_v24 = vadd.f32 1e-06, %v121_v10 }
  0xc4   :  { %v230_v11 = vpop.f32.mrf.mxu1 }
  0xc5   :  { %v231_v33 = vadd.f32 %v230_v11, %v122_v24  ;;  %v584_v24 = vld [vmem:[%s966_s2] ss:$0 sm:$0xff] }
  0xc6   :  { %v288_v17 = vpop.f32.mrf.mxu2 }
  0xc7   :  { %v129_v27 = vpop.f32.mrf.mxu0  ;;  %v289_v46 = vadd.f32 %v288_v17, %v231_v33 }
  0xc8   :  { %v332_v21 = vpop.f32.mrf.mxu3  ;;  %v130_v29 = vadd.f32 1e-06, %v129_v27 }
  0xc9   :  { %v333_v58 = vadd.f32 %v332_v21, %v289_v46 }
  0xce   :  { %v234_v35 = vpop.f32.mrf.mxu1 }
  0xcf   :  { %v293_v40 = vpop.f32.mrf.mxu2  ;;  %v235_v41 = vadd.f32 %v234_v35, %v130_v29 }
  0xd1   :  { %v294_v52 = vadd.f32 %v293_v40, %v235_v41  ;;  %v407_v57 = vpop.f32.mrf.mxu0 }
  0xd2   :  { %v338_v47 = vpop.f32.mrf.mxu3  ;;  %v408_v62 = vadd.f32 %v407_v57, %v333_v58 }
  0xd3   :  { %v339_v63 = vadd.f32 %v338_v47, %v294_v52 }
  0xd9   :  { %v411_v0 = vpop.f32.mrf.mxu2  ;;  %v448_v1 = vpop.f32.mrf.mxu1 }
  0xda   :  { %v412_v2 = vadd.f32 %v411_v0, %v339_v63  ;;  %v449_v6 = vadd.f32 %v448_v1, %v408_v62 }
  0xdb   :  { %v452_v7 = vpop.f32.mrf.mxu3 }
  0xdc   :  { %585 = vrsqrt.f32 %v449_v6  ;;  %v453_v8 = vadd.f32 %v452_v7, %v412_v2  ;;  %vm462_vm0 = vcmp.eq.f32.partialorder %v449_v6, inf  ;;  %v465_v32 = vand.u32 2147483648, %v449_v6 }
  0xdd   :  { %vm464_vm1 = vcmp.eq.f32.partialorder %v449_v6, 0.0 }
  0xde   :  { %587 = vrsqrt.f32 %v453_v8  ;;  %vm474_vm2 = vcmp.eq.f32.partialorder %v453_v8, inf  ;;  %v477_v42 = vand.u32 2147483648, %v453_v8  ;;  %vm476_vm3 = vcmp.eq.f32.partialorder %v453_v8, 0.0 }
  0xe2   :  { %v586_v12 = vpop.eup %585 }
  0xe3   :  { %v456_v13 = vmul.f32 %v586_v12, %v449_v6 }
  0xe4   :  { %v588_v14 = vpop.eup %587 }
  0xe5   :  { %v457_v15 = vmul.f32 %v586_v12, %v456_v13  ;;  %v468_v16 = vmul.f32 %v588_v14, %v453_v8 }
  0xe7   :  { %v458_v18 = vmul.f32 0.5, %v457_v15  ;;  %v469_v19 = vmul.f32 %v588_v14, %v468_v16 }
  0xe9   :  { %v459_v20 = vsub.f32 1.5, %v458_v18  ;;  %v470_v25 = vmul.f32 0.5, %v469_v19 }
  0xeb   :  { %v460_v26 = vmul.f32 %v586_v12, %v459_v20  ;;  %v471_v30 = vsub.f32 1.5, %v470_v25 }
  0xed   :  { %v461_v31 = vmul.f32 %v460_v26, %v449_v6  ;;  %v472_v34 = vmul.f32 %v588_v14, %v471_v30 }
  0xef   :  { %v463_v36 = vsel %vm462_vm0, %v449_v6, %v461_v31  ;;  %v473_v38 = vmul.f32 %v472_v34, %v453_v8 }
  0xf0   :  { %v466_v37 = vsel %vm464_vm1, %v465_v32, %v463_v36 }
  0xf1   :  { %v479_v39 = vadd.f32 1e-06, %v466_v37  ;;  %v475_v43 = vsel %vm474_vm2, %v453_v8, %v473_v38 }
  0xf2   :  { %v478_v44 = vsel %vm476_vm3, %v477_v42, %v475_v43 }
  0xf3   :  { %589 = vrcp.f32 %v479_v39  ;;  %v480_v45 = vadd.f32 1e-06, %v478_v44  ;;  %v492_v54 = vand.u32 2147483648, %v479_v39  ;;  %v490_v59 = vand.u32 2147483647, %v479_v39 }
  0xf4   :  { %vm486_vm5 = vweird.f32 %v479_v39 }
  0xf5   :  { %591 = vrcp.f32 %v480_v45  ;;  %v506_v22 = vand.u32 2147483648, %v480_v45  ;;  %v493_v23 = vor.u32 1.1754944e-38, %v492_v54  ;;  %v504_v4 = vand.u32 2147483647, %v480_v45 }
  0xf6   :  { %vm491_vm8 = vcmp.eq.f32.partialorder %v490_v59, 8.507059e+37  ;;  %vm500_vm9 = vweird.f32 %v480_v45 }
  0xf7   :  { %v507_v17 = vor.u32 1.1754944e-38, %v506_v22  ;;  %vm505_vm11 = vcmp.eq.f32.partialorder %v504_v4, 8.507059e+37 }
  0xf9   :  { %v590_v48 = vpop.eup %589 }
  0xfa   :  { %v482_v49 = vmul.f32 %v590_v48, %v479_v39  ;;  %vm487_vm4 = vweird.f32 %v590_v48 }
  0xfb   :  { %v592_v50 = vpop.eup %591  ;;  %vm488_vm6 = vmor %vm486_vm5, %vm487_vm4 }
  0xfc   :  { %v483_v51 = vsub.f32 1.0, %v482_v49  ;;  %v496_v55 = vmul.f32 %v592_v50, %v480_v45  ;;  %vm501_vm7 = vweird.f32 %v592_v50 }
  0xfd   :  { %vm502_vm10 = vmor %vm500_vm9, %vm501_vm7 }
  0xfe   :  { %v484_v56 = vmul.f32 %v590_v48, %v483_v51  ;;  %v497_v60 = vsub.f32 1.0, %v496_v55 }
 0x100   :  { %v485_v61 = vadd.f32 %v590_v48, %v484_v56  ;;  %v498_v3 = vmul.f32 %v592_v50, %v497_v60 }
 0x102   :  { %v489_v5 = vsel %vm488_vm6, %v590_v48, %v485_v61  ;;  %v499_v11 = vadd.f32 %v592_v50, %v498_v3 }
 0x103   :  { %v494_v10 = vsel %vm491_vm8, %v493_v23, %v489_v5 }
 0x104   :  { %v510_v21 = vmul.f32 %v494_v10, %v846_v28  ;;  %v503_v27 = vsel %vm502_vm10, %v592_v50, %v499_v11 }
 0x105   :  { %v508_v29 = vsel %vm505_vm11, %v507_v17, %v503_v27 }
 0x106   :  { %v515_v33 = vmul.f32 %v583_v9, %v510_v21  ;;  %v511_v35 = vmul.f32 %v508_v29, %v874_v53 }
 0x108   :  { %v521_v40 = vadd.f32 %v584_v24, %v515_v33  ;;  %v516_v41 = vmul.f32 %v583_v9, %v511_v35 }
 0x10a   :  { %523 = vst [vmem:[#allocation8] sm:$0xff] %v521_v40  ;;  %v522_v28 = vadd.f32 %v584_v24, %v516_v41 }
 0x10c   :  { %524 = vst [vmem:[#allocation8 + $0x8] sm:$0xff] %v522_v28 }
 0x10d   :  { %537 = dma.vmem_to_hbm [thread:$0]  %s530_s6, 256, %s532_s9, [#allocation4], %s697_s25, %s697_s25, %s698_s26  }
 0x10e   :  { %693 = dma.done.wait [#allocation4], 256  }
 0x10f   :  { %694 = vsyncadd [#allocation4], 4294967040 }
 0x110   :  { %542 = vsyncpa [#allocation3], 1 }
 0x111   :  { %543 = vsyncpa [#allocation6], 1 }
 0x112   :  { %544 = vsyncpa [#allocation4], 1 }

</bundles_post_ra>
